<compile_context>
chip_gen: v7x
topology: tpu7x:2x2x1
jax: 0.10.0
libtpu: 0.0.40
codegen_flags: <defaults>
</compile_context>

<pallas_src>
import functools

import jax
import jax.numpy as jnp
from jax.experimental import pallas as pl
from jax.experimental.pallas import tpu as pltpu


def _lb_loss_kernel(x_ref, t_ref, acc_ref, *, k, beta, batch, tile_b, n_inner,
                    need_mask, mxu_row_sums):
    """Fold per-tile elementwise loss partials into a resident (8, C) accumulator.

    Grid is (core_split, batch_tiles_per_split).  The inner axis is the
    sequential reduction axis: the output block keeps the same block index for
    every inner step, so it acts as a per-core VMEM vector accumulator (P3).
    """
    c_idx = pl.program_id(0)
    i = pl.program_id(1)

    @pl.when(i == 0)
    def _():
        acc_ref[...] = jnp.zeros_like(acc_ref)

    x = x_ref[...].astype(jnp.float32)   # (TB, C)
    t = t_ref[...].astype(jnp.float32)   # (TB, C)
    tb, c = x.shape

    if mxu_row_sums:
        # Offload lane sums to the otherwise-idle MXU; row_max stays on the XLU.
        ones_col = jnp.ones((c, 1), jnp.float32)
        row_sum = jnp.dot(x, ones_col, preferred_element_type=jnp.float32)
    else:
        row_sum = jnp.sum(x, axis=1, keepdims=True)                   # (TB, 1)

    # v = x - mean(x, axis=1, keepdims=True)
    v = x - row_sum * jnp.float32(1.0 / c)

    # numerically-stable log-softmax pieces
    row_max = jnp.max(v, axis=1, keepdims=True)                       # (TB, 1)
    s = v - row_max
    es = jnp.exp(s)
    if mxu_row_sums:
        sum_es = jnp.dot(es, ones_col, preferred_element_type=jnp.float32)
    else:
        sum_es = jnp.sum(es, axis=1, keepdims=True)                   # (TB, 1)
    lse = jnp.log(sum_es)                                             # (TB, 1)

    # |v| ** beta: small integer beta stays on the VPU (even beta skips abs);
    # only non-integer beta pays the EUP pow (exp + log) cost.
    b_int = int(beta)
    if float(beta) == b_int and 1 <= b_int <= 4:
        if b_int % 2 == 0:
            base, reps = v * v, b_int // 2
        else:
            base, reps = jnp.abs(v), b_int
        pw = base
        for _ in range(reps - 1):
            pw = pw * base
    else:
        pw = jnp.abs(v) ** jnp.float32(beta)

    # elementwise partial of  -t * logp + 0.5*k*|v|**beta,  with logp = s - lse
    partial = t * (lse - s) + jnp.float32(0.5 * k) * pw

    if need_mask:
        # Mask rows past the true batch size: covers the ragged tail of the last
        # real tile AND fully-out-of-range steps whose DMA index was clamped.
        tile_lin = c_idx * n_inner + i          # UNclamped linear tile index
        row0 = tile_lin * tile_b
        rows = row0 + jax.lax.broadcasted_iota(jnp.int32, (tb, 1), 0)
        partial = jnp.where(rows < batch, partial, jnp.float32(0.0))

    # Fold (TB, C) down to the (8, C) resident accumulator: the reshape is
    # (8,128)-tile aligned (free) and the axis-0 sum is pure VPU adds.
    acc_ref[...] += partial.reshape(tb // 8, 8, c).sum(axis=0)


def _round_up(x, m):
    return ((x + m - 1) // m) * m


def lb_loss(inputs, targets, *, k=1, beta=1, tile_b=None, mxu_row_sums=False,
            vmem_budget_bytes=8 * 1024 * 1024):
    """LBLoss forward. inputs/targets: [B, C]. Returns a scalar f32."""
    assert inputs.ndim == 2 and inputs.shape == targets.shape
    B, C = inputs.shape

    in_itemsize = (jnp.dtype(inputs.dtype).itemsize
                   + jnp.dtype(targets.dtype).itemsize)

    if tile_b is None:
        # Largest batch tile whose double-buffered inputs (2 arrays x 2 bufs)
        # plus ~5 rows of f32 intermediates fit a conservative budget — safe
        # for every generation's default scoped-VMEM limit.
        per_row_bytes = C * (2 * in_itemsize + 5 * 4)
        tb = vmem_budget_bytes // max(per_row_bytes, 1)
        tile_b = (max(8, min(int(tb), 1024)) // 8) * 8
    tile_b = max(8, min(tile_b, _round_up(B, 8)))
    assert tile_b % 8 == 0

    n_tiles = -(-B // tile_b)                       # ceil div
    num_split = 2 if n_tiles >= 2 else 1            # both TCs on v7x; harmless elsewhere
    n_inner = -(-n_tiles // num_split)
    # Mask only when some row of some step falls past the true batch size.
    need_mask = (num_split * n_inner * tile_b != B)
    assert (not need_mask) or beta > 0, "masking assumes finite |v|**beta handling"

    kernel = functools.partial(
        _lb_loss_kernel, k=k, beta=beta, batch=B, tile_b=tile_b,
        n_inner=n_inner, need_mask=need_mask, mxu_row_sums=mxu_row_sums)

    def in_map(c_idx, i):
        lin = c_idx * n_inner + i
        # Clamp so steps past the last real tile issue a valid DMA; their
        # contribution is zeroed in-kernel via the UNclamped row mask.
        return (jnp.minimum(lin, n_tiles - 1), 0)

    partials = pl.pallas_call(
        kernel,
        out_shape=jax.ShapeDtypeStruct((num_split * 8, C), jnp.float32),
        grid_spec=pltpu.PrefetchScalarGridSpec(
            num_scalar_prefetch=0,
            grid=(num_split, n_inner),
            in_specs=[
                pl.BlockSpec((tile_b, C), in_map),
                pl.BlockSpec((tile_b, C), in_map),
            ],
            # same block index across the inner axis -> resident accumulator
            out_specs=pl.BlockSpec((8, C), lambda c_idx, i: (c_idx, 0)),
        ),
        compiler_params=pltpu.CompilerParams(
            # outer axis: independent per-core partials (megacore sharding)
            # inner axis: sequential accumulation into the resident out block
            dimension_semantics=("parallel", "arbitrary"),
        ),
    )(inputs, targets)

    # single tiny final reduction + normalization, once, outside the hot loop
    return jnp.sum(partials) / jnp.float32(B)


def lb_loss_ref(inputs, targets, *, k=1, beta=1):
    x = inputs.astype(jnp.float32)
    t = targets.astype(jnp.float32)
    v = x - jnp.mean(x, axis=1, keepdims=True)
    logp = jax.nn.log_softmax(v, axis=1)
    L = -jnp.sum(t * logp) + 0.5 * k * jnp.sum(jnp.abs(v) ** beta)
    return L / x.shape[0]


if __name__ == "__main__":
    root = jax.random.PRNGKey(0)

    def make_case(seed, B, C):
        k1, k2 = jax.random.split(jax.random.fold_in(root, seed))
        x = jax.random.normal(k1, (B, C), dtype=jnp.float32)
        t = jax.nn.softmax(jax.random.normal(k2, (B, C), dtype=jnp.float32), axis=1)
        return x, t

    # case 1: single tile, ragged batch (exercises in-kernel row masking)
    x, t = make_case(0, 50, 128)
    out = jax.block_until_ready(lb_loss(x, t, k=1, beta=1))
    ref = lb_loss_ref(x, t, k=1, beta=1)
    assert jnp.allclose(out, ref, rtol=1e-4, atol=1e-4), (out, ref)

    # case 2: many tiles + 2-way core split + even-integer-beta VPU fast path
    #         (odd tile count -> clamped, fully-masked trailing step)
    x, t = make_case(1, 200, 128)
    out = jax.block_until_ready(lb_loss(x, t, k=3, beta=2, tile_b=16))
    ref = lb_loss_ref(x, t, k=3, beta=2)
    assert jnp.allclose(out, ref, rtol=1e-4, atol=1e-4), (out, ref)

    # case 3: fractional beta (generic pow path) + ragged tail + clamp step
    x, t = make_case(2, 37, 128)
    out = jax.block_until_ready(lb_loss(x, t, k=0.5, beta=1.5, tile_b=8))
    ref = lb_loss_ref(x, t, k=0.5, beta=1.5)
    assert jnp.allclose(out, ref, rtol=1e-4, atol=1e-4), (out, ref)

    print("KERNEL_OK")
</pallas_src>

<mosaic_0001>
module attributes {stable_mosaic.version = 11 : i64} {
  func.func @_lb_loss_kernel(%arg0: i32, %arg1: i32, %arg2: memref<56x128xf32, #tpu.memory_space<vmem>>, %arg3: memref<56x128xf32, #tpu.memory_space<vmem>>, %arg4: memref<8x128xf32, #tpu.memory_space<vmem>>) attributes {dimension_semantics = [#tpu.dimension_semantics<parallel>, #tpu.dimension_semantics<arbitrary>], iteration_bounds = array<i64: 1, 1>, scalar_prefetch = 0 : i64, scratch_operands = 0 : i64, tpu.core_type = #tpu.core_type<tc>, window_params = [{transform_indices = @transform_0, window_bounds = array<i64: 56, 128>}, {transform_indices = @transform_1, window_bounds = array<i64: 56, 128>}, {transform_indices = @transform_2, window_bounds = array<i64: 8, 128>}]} {
    %c0_i32 = arith.constant 0 : i32
    %0 = arith.cmpi eq, %arg1, %c0_i32 : i32
    %1 = arith.extui %0 : i1 to i32
    %c0_i32_0 = arith.constant 0 : i32
    %2 = arith.cmpi ne, %1, %c0_i32_0 : i32
    scf.if %2 {
      %cst_14 = arith.constant 0.000000e+00 : f32
      %43 = vector.broadcast %cst_14 : f32 to vector<8x128xf32>
      %c0_15 = arith.constant 0 : index
      %c0_16 = arith.constant 0 : index
      %44 = vector.load %arg4[%c0_15, %c0_16] : memref<8x128xf32, #tpu.memory_space<vmem>>, vector<8x128xf32>
      tpu.vector_store %arg4[%c0_15, %c0_16], %43 {strides = array<i32>} : memref<8x128xf32, #tpu.memory_space<vmem>>, vector<8x128xf32>,
    } else {
    }
    %c0 = arith.constant 0 : index
    %c0_1 = arith.constant 0 : index
    %3 = vector.load %arg2[%c0, %c0_1] : memref<56x128xf32, #tpu.memory_space<vmem>>, vector<56x128xf32>
    %c0_2 = arith.constant 0 : index
    %c0_3 = arith.constant 0 : index
    %4 = vector.load %arg3[%c0_2, %c0_3] : memref<56x128xf32, #tpu.memory_space<vmem>>, vector<56x128xf32>
    %cst = arith.constant dense<0.000000e+00> : vector<56xf32>
    %5 = vector.multi_reduction <add>, %3, %cst [1] : vector<56x128xf32> to vector<56xf32>
    %6 = vector.shape_cast %5 : vector<56xf32> to vector<56x1xf32>
    %cst_4 = arith.constant 7.812500e-03 : f32
    %7 = vector.broadcast %cst_4 : f32 to vector<56x1xf32>
    %8 = arith.mulf %6, %7 : vector<56x1xf32>
    %9 = vector.broadcast %8 : vector<56x1xf32> to vector<56x128xf32>
    %10 = arith.subf %3, %9 : vector<56x128xf32>
    %cst_5 = arith.constant dense<0xFF800000> : vector<56xf32>
    %11 = vector.multi_reduction <maximumf>, %10, %cst_5 [1] : vector<56x128xf32> to vector<56xf32>
    %12 = vector.shape_cast %11 : vector<56xf32> to vector<56x1xf32>
    %13 = vector.broadcast %12 : vector<56x1xf32> to vector<56x128xf32>
    %14 = arith.subf %10, %13 : vector<56x128xf32>
    %15 = math.exp %14 : vector<56x128xf32>
    %cst_6 = arith.constant dense<0.000000e+00> : vector<56xf32>
    %16 = vector.multi_reduction <add>, %15, %cst_6 [1] : vector<56x128xf32> to vector<56xf32>
    %17 = vector.shape_cast %16 : vector<56xf32> to vector<56x1xf32>
    %18 = math.log %17 : vector<56x1xf32>
    %19 = math.absf %10 : vector<56x128xf32>
    %20 = vector.broadcast %18 : vector<56x1xf32> to vector<56x128xf32>
    %21 = arith.subf %20, %14 : vector<56x128xf32>
    %22 = arith.mulf %4, %21 : vector<56x128xf32>
    %cst_7 = arith.constant 5.000000e-01 : f32
    %23 = vector.broadcast %cst_7 : f32 to vector<56x128xf32>
    %24 = arith.mulf %23, %19 : vector<56x128xf32>
    %25 = arith.addf %22, %24 : vector<56x128xf32>
    %c1_i32 = arith.constant 1 : i32
    %26 = arith.muli %arg0, %c1_i32 : i32
    %27 = arith.addi %26, %arg1 : i32
    %c56_i32 = arith.constant 56 : i32
    %28 = arith.muli %27, %c56_i32 : i32
    %29 = tpu.iota {dimensions = array<i32: 0>} : vector<56x1xi32>
    %30 = vector.broadcast %28 : i32 to vector<56x1xi32>
    %31 = arith.addi %30, %29 : vector<56x1xi32>
    %c50_i32 = arith.constant 50 : i32
    %32 = vector.broadcast %c50_i32 : i32 to vector<56x1xi32>
    %33 = arith.cmpi slt, %31, %32 : vector<56x1xi32>
    %cst_8 = arith.constant 0.000000e+00 : f32
    %34 = vector.shape_cast %33 : vector<56x1xi1> to vector<56x1xi1>
    %35 = vector.broadcast %34 : vector<56x1xi1> to vector<56x128xi1>
    %36 = vector.broadcast %cst_8 : f32 to vector<56x128xf32>
    %37 = arith.select %35, %25, %36 : vector<56x128xi1>, vector<56x128xf32>
    %c0_9 = arith.constant 0 : index
    %c0_10 = arith.constant 0 : index
    %38 = vector.load %arg4[%c0_9, %c0_10] : memref<8x128xf32, #tpu.memory_space<vmem>>, vector<8x128xf32>
    %39 = vector.shape_cast %37 : vector<56x128xf32> to vector<7x8x128xf32>
    %cst_11 = arith.constant dense<0.000000e+00> : vector<8x128xf32>
    %40 = vector.multi_reduction <add>, %39, %cst_11 [0] : vector<7x8x128xf32> to vector<8x128xf32>
    %41 = arith.addf %38, %40 : vector<8x128xf32>
    %c0_12 = arith.constant 0 : index
    %c0_13 = arith.constant 0 : index
    %42 = vector.load %arg4[%c0_12, %c0_13] : memref<8x128xf32, #tpu.memory_space<vmem>>, vector<8x128xf32>
    tpu.vector_store %arg4[%c0_12, %c0_13], %41 {strides = array<i32>} : memref<8x128xf32, #tpu.memory_space<vmem>>, vector<8x128xf32>,
    return
  }
  func.func @transform_0(%arg0: i32, %arg1: i32) -> (i32, i32) {
    %c1_i32 = arith.constant 1 : i32
    %0 = arith.muli %arg0, %c1_i32 : i32
    %1 = arith.addi %0, %arg1 : i32
    %c0_i32 = arith.constant 0 : i32
    %2 = arith.minsi %1, %c0_i32 : i32
    %c0_i32_0 = arith.constant 0 : i32
    %c0_i32_1 = arith.constant 0 : i32
    return %2, %c0_i32_0 : i32, i32
  }
  func.func @transform_1(%arg0: i32, %arg1: i32) -> (i32, i32) {
    %c1_i32 = arith.constant 1 : i32
    %0 = arith.muli %arg0, %c1_i32 : i32
    %1 = arith.addi %0, %arg1 : i32
    %c0_i32 = arith.constant 0 : i32
    %2 = arith.minsi %1, %c0_i32 : i32
    %c0_i32_0 = arith.constant 0 : i32
    %c0_i32_1 = arith.constant 0 : i32
    return %2, %c0_i32_0 : i32, i32
  }
  func.func @transform_2(%arg0: i32, %arg1: i32) -> (i32, i32) {
    %c0_i32 = arith.constant 0 : i32
    %c0_i32_0 = arith.constant 0 : i32
    return %arg0, %c0_i32 : i32, i32
  }
}

</mosaic_0001>

<bundles_post_ra>
// kernel: tpu_custom_call.1
= control target key start
LH: loop header
LB: loop body
LE: loop exit
PB: predicated region body
PF: predicated region fallthrough
CT: control target
= control target key end

     0   :  { %7 = vsyncpa [#allocation3], 0  ;;  %s505_s0 = inlined_call_operand.hbm [shape: f32[50,128], index: 0, kind: input, shape index: {}]   ;;  %s506_s1 = inlined_call_operand.hbm [shape: f32[50,128], index: 1, kind: input, shape index: {}]   ;;  %s507_s2 = inlined_call_operand.hbm [shape: f32[8,128], index: 2, kind: output, shape index: {}]  }
   0x1   :  { %8 = vsyncpa [#allocation6], 0 }
   0x2   :  { %9 = vsyncpa [#allocation4], 0  ;;  %s386_s9 = smov [#allocation2]   ;;  %s314_s13 = scalar_lea.hbm %s505_s0, 896 }
   0x3   :  { %s21_s10 = sshll.u32 %s386_s9, 4  ;;  %p315_p0 = scmp.ne.s32.totalorder %s505_s0, %s314_s13  ;;  %s22_s10 = int_to_ptr.vmem [resolvable:$true] %s21_s10 }
   0x4   :  { %p318_p1 = scmp.lt.u32.totalorder %s314_s13, %s505_s0 }
   0x6   :  { %p320_p2 = pnand %p318_p1, %p315_p0 }
   0x8   :  { %323 = shalt.err (!%p320_p2)
}
   0x9   :  { %s324_s18 = scalar_lea.vmem %s22_s10, 896  ;;  %p329_p4 = scmp.lt.s32.totalorder %s22_s10, %s22_s10 }
   0xa   :  { %p325_p3 = scmp.ne.s32.totalorder %s22_s10, %s324_s18  ;;  %p330_p5 = scmp.lt.s32.totalorder %s324_s18, %s324_s18 }
   0xc   :  { %p331_p6 = por %p330_p5, %p329_p4 }
   0xe   :  { %p332_p7 = pnand %p331_p6, %p325_p3 }
  0x10   :  { %335 = shalt.err (!%p332_p7)
}
  0x11   :  { %s387_s19 = smov 128   ;;  %s388_s20 = smov 8  }
  0x12   :  { %27 = dma.hbm_to_vmem [thread:$0]  %s505_s0, 896, %s22_s10, [#allocation3], %s387_s19, %s387_s19, %s388_s20  }
  0x13   :  { %s389_s23 = smov [#allocation5]   ;;  %s336_s27 = scalar_lea.hbm %s506_s1, 896 }
  0x14   :  { %s39_s24 = sshll.u32 %s389_s23, 4  ;;  %p337_p8 = scmp.ne.s32.totalorder %s506_s1, %s336_s27  ;;  %s40_s24 = int_to_ptr.vmem [resolvable:$true] %s39_s24 }
  0x15   :  { %p340_p9 = scmp.lt.u32.totalorder %s336_s27, %s506_s1 }
  0x17   :  { %p342_p10 = pnand %p340_p9, %p337_p8 }
  0x19   :  { %345 = shalt.err (!%p342_p10)
}
  0x1a   :  { %s346_s4 = scalar_lea.vmem %s40_s24, 896  ;;  %p351_p12 = scmp.lt.s32.totalorder %s40_s24, %s40_s24 }
  0x1b   :  { %p347_p11 = scmp.ne.s32.totalorder %s40_s24, %s346_s4  ;;  %p352_p13 = scmp.lt.s32.totalorder %s346_s4, %s346_s4 }
  0x1d   :  { %p353_p0 = por %p352_p13, %p351_p12 }
  0x1f   :  { %p354_p1 = pnand %p353_p0, %p347_p11 }
  0x21   :  { %357 = shalt.err (!%p354_p1)
}
  0x22   :  { %45 = dma.hbm_to_vmem [thread:$0]  %s506_s1, 896, %s40_s24, [#allocation6], %s387_s19, %s387_s19, %s388_s20  }
  0x23   :  { %380 = dma.done.wait [#allocation3], 896  }
  0x24   :  { %381 = vsyncadd [#allocation3], 4294966400 }
  0x25   :  { %382 = dma.done.wait [#allocation6], 896  }
  0x26   :  { %383 = vsyncadd [#allocation6], 4294966400  ;;  %v65_v0 = vld [vmem:[#allocation2] sm:$0xff]  ;;  %v67_v1 = vld [vmem:[#allocation2 + $0x10] sm:$0xff]  ;;  %s390_s1 = smov [#allocation7]  }
  0x27   :  { %79 = vadd.xlane.f32.xlu0 %v65_v0  ;;  %83 = vadd.xlane.f32.xlu1 %v67_v1  ;;  %v66_v2 = vld [vmem:[#allocation2 + $0x8] sm:$0xff]  ;;  %v68_v3 = vld [vmem:[#allocation2 + $0x18] sm:$0xff]  ;;  %v69_v4 = vld [vmem:[#allocation2 + $0x20] sm:$0xff]  ;;  %s266_s6 = sshll.u32 %s390_s1, 4  ;;  %s267_s6 = int_to_ptr.vmem [resolvable:$true] %s266_s6 }
  0x28   :  { %v70_v5 = vld [vmem:[#allocation2 + $0x28] sm:$0xff]  ;;  %v71_v6 = vld [vmem:[#allocation2 + $0x30] sm:$0xff]  ;;  %s358_s7 = scalar_lea.vmem %s267_s6, 128  ;;  %p363_p3 = scmp.lt.s32.totalorder %s267_s6, %s267_s6 }
  0x29   :  { %p359_p2 = scmp.ne.s32.totalorder %s267_s6, %s358_s7  ;;  %p364_p4 = scmp.lt.s32.totalorder %s358_s7, %s358_s7 }
  0x2b   :  { %81 = vadd.xlane.f32.xlu0 %v66_v2  ;;  %85 = vadd.xlane.f32.xlu1 %v68_v3  ;;  %p365_p5 = por %p364_p4, %p363_p3 }
  0x2d   :  { %p366_p6 = pnand %p365_p5, %p359_p2 }
  0x2f   :  { %87 = vadd.xlane.f32.xlu0 %v69_v4  ;;  %89 = vadd.xlane.f32.xlu1 %v70_v5 }
  0x33   :  { %91 = vadd.xlane.f32.xlu0 %v71_v6 }
  0xb4   :  { %v80_v7 = vpop.xlane.xlu0 %79  ;;  %v84_v8 = vpop.xlane.xlu1 %83 }
  0xb5   :  { %v93_v9 = vmul.f32 0.0078125, %v80_v7  ;;  %v95_v10 = vmul.f32 0.0078125, %v84_v8  ;;  %v207_v7 = vlaneseq }
  0xb7   :  { %v430_v11 = vsub.f32 %v65_v0, %v93_v9  ;;  %v432_v14 = vsub.f32 %v67_v1, %v95_v10  ;;  %v74_v10 = vld [vmem:[#allocation5 + $0x10] sm:$0xff] }
  0xb8   :  { %v82_v12 = vpop.xlane.xlu0 %81  ;;  %v86_v13 = vpop.xlane.xlu1 %85 }
  0xb9   :  { %v94_v15 = vmul.f32 0.0078125, %v82_v12  ;;  %107 = vmax.xlane.f32.xlu1 %v430_v11  ;;  %v96_v16 = vmul.f32 0.0078125, %v86_v13  ;;  %v172_v12 = vand.u32 2147483647, %v432_v14 }
  0xbb   :  { %v435_v17 = vsub.f32 %v66_v2, %v94_v15  ;;  %v437_v20 = vsub.f32 %v68_v3, %v96_v16  ;;  %v73_v15 = vld [vmem:[#allocation5 + $0x8] sm:$0xff] }
  0xbc   :  { %v88_v18 = vpop.xlane.xlu0 %87  ;;  %v90_v19 = vpop.xlane.xlu1 %89 }
  0xbd   :  { %v97_v21 = vmul.f32 0.0078125, %v88_v18  ;;  %111 = vmax.xlane.f32.xlu1 %v432_v14  ;;  %109 = vmax.xlane.f32.xlu0 %v435_v17  ;;  %v98_v22 = vmul.f32 0.0078125, %v90_v19  ;;  %v171_v8 = vand.u32 2147483647, %v435_v17  ;;  %v173_v13 = vand.u32 2147483647, %v437_v20 }
  0xbf   :  { %v441_v23 = vsub.f32 %v69_v4, %v97_v21  ;;  %v443_v25 = vsub.f32 %v70_v5, %v98_v22  ;;  %v170_v4 = vand.u32 2147483647, %v430_v11  ;;  %v72_v5 = vld [vmem:[#allocation5] sm:$0xff] }
  0xc0   :  { %v92_v24 = vpop.xlane.xlu0 %91 }
  0xc1   :  { %v99_v26 = vmul.f32 0.0078125, %v92_v24  ;;  %113 = vmax.xlane.f32.xlu0 %v437_v20  ;;  %115 = vmax.xlane.f32.xlu1 %v441_v23 }
  0xc3   :  { %v447_v27 = vsub.f32 %v71_v6, %v99_v26  ;;  %v208_v26 = vshrl.u32 %v207_v7, 7 }
  0xc5   :  { %117 = vmax.xlane.f32.xlu0 %v443_v25  ;;  %119 = vmax.xlane.f32.xlu1 %v447_v27 }
 0x146   :  { %v108_v28 = vpop.xlane.xlu1 %107 }
 0x147   :  { %v452_v29 = vsub.f32 %v430_v11, %v108_v28  ;;  %v191_v28 = vmul.f32 0.5, %v170_v4 }
 0x149   :  { %v128_v30 = vmul.f32 1.442695, %v452_v29 }
 0x14a   :  { %v112_v31 = vpop.xlane.xlu1 %111  ;;  %v110_v32 = vpop.xlane.xlu0 %109 }
 0x14b   :  { %286 = vpow2.f32 %v128_v30  ;;  %v456_v33 = vsub.f32 %v432_v14, %v112_v31  ;;  %v459_v34 = vsub.f32 %v435_v17, %v110_v32  ;;  %v193_v31 = vmul.f32 0.5, %v172_v12 }
 0x14c   :  { %v194_v32 = vmul.f32 0.5, %v173_v13  ;;  %v174_v14 = vand.u32 2147483647, %v441_v23 }
 0x14d   :  { %v132_v35 = vmul.f32 1.442695, %v456_v33  ;;  %v130_v36 = vmul.f32 1.442695, %v459_v34 }
 0x14e   :  { %v116_v37 = vpop.xlane.xlu1 %115  ;;  %v114_v38 = vpop.xlane.xlu0 %113 }
 0x14f   :  { %288 = vpow2.f32 %v132_v35  ;;  %v464_v39 = vsub.f32 %v441_v23, %v116_v37  ;;  %v467_v40 = vsub.f32 %v437_v20, %v114_v38  ;;  %v75_v20 = vld [vmem:[#allocation5 + $0x18] sm:$0xff]  ;;  %v76_v35 = vld [vmem:[#allocation5 + $0x20] sm:$0xff]  ;;  %v175_v37 = vand.u32 2147483647, %v443_v25 }
 0x150   :  { %290 = vpow2.f32 %v130_v36 }
 0x151   :  { %v136_v41 = vmul.f32 1.442695, %v464_v39  ;;  %v134_v42 = vmul.f32 1.442695, %v467_v40 }
 0x152   :  { %v120_v43 = vpop.xlane.xlu1 %119  ;;  %v118_v44 = vpop.xlane.xlu0 %117 }
 0x153   :  { %292 = vpow2.f32 %v136_v41  ;;  %v472_v45 = vsub.f32 %v447_v27, %v120_v43  ;;  %v475_v46 = vsub.f32 %v443_v25, %v118_v44  ;;  %v176_v43 = vand.u32 2147483647, %v447_v27 }
 0x154   :  { %294 = vpow2.f32 %v134_v42 }
 0x155   :  { %v287_v47 = vpop.eup %286  ;;  %v140_v48 = vmul.f32 1.442695, %v472_v45  ;;  %v138_v49 = vmul.f32 1.442695, %v475_v46 }
 0x156   :  { %142 = vadd.xlane.f32.xlu0 %v287_v47 }
 0x157   :  { %296 = vpow2.f32 %v140_v48  ;;  %v214_v48 = vadd.s32 48, %v208_v26 }
 0x158   :  { %298 = vpow2.f32 %v138_v49 }
 0x159   :  { %v289_v50 = vpop.eup %288  ;;  %vm229_vm0 = vcmp.lt.s32.totalorder %v214_v48, 50 }
 0x15a   :  { %v291_v51 = vpop.eup %290  ;;  %146 = vadd.xlane.f32.xlu0 %v289_v50 }
 0x15b   :  { %144 = vadd.xlane.f32.xlu1 %v291_v51 }
 0x15d   :  { %v293_v52 = vpop.eup %292 }
 0x15e   :  { %v295_v53 = vpop.eup %294  ;;  %150 = vadd.xlane.f32.xlu0 %v293_v52  ;;  %v78_v52 = vld [vmem:[#allocation5 + $0x30] sm:$0xff] }
 0x15f   :  { %148 = vadd.xlane.f32.xlu1 %v295_v53  ;;  %v77_v53 = vld [vmem:[#allocation5 + $0x28] sm:$0xff] }
 0x161   :  { %v297_v54 = vpop.eup %296 }
 0x162   :  { %v299_v55 = vpop.eup %298  ;;  %154 = vadd.xlane.f32.xlu0 %v297_v54  ;;  %v195_v54 = vmul.f32 0.5, %v174_v14 }
 0x163   :  { %152 = vadd.xlane.f32.xlu1 %v299_v55 }
 0x1e3   :  { %v143_v56 = vpop.xlane.xlu0 %142 }
 0x1e4   :  { %300 = vlog2.f32 %v143_v56 }
 0x1e7   :  { %v147_v57 = vpop.xlane.xlu0 %146 }
 0x1e8   :  { %v145_v58 = vpop.xlane.xlu1 %144  ;;  %302 = vlog2.f32 %v147_v57  ;;  %v197_v57 = vmul.f32 0.5, %v176_v43 }
 0x1e9   :  { %304 = vlog2.f32 %v145_v58 }
 0x1eb   :  { %v151_v59 = vpop.xlane.xlu0 %150 }
 0x1ec   :  { %v149_v60 = vpop.xlane.xlu1 %148  ;;  %306 = vlog2.f32 %v151_v59 }
 0x1ed   :  { %308 = vlog2.f32 %v149_v60 }
 0x1ee   :  { %v301_v61 = vpop.eup %300 }
 0x1ef   :  { %v157_v62 = vmul.f32 0.6931472, %v301_v61  ;;  %v155_v63 = vpop.xlane.xlu0 %154 }
 0x1f0   :  { %v153_v0 = vpop.xlane.xlu1 %152  ;;  %310 = vlog2.f32 %v155_v63 }
 0x1f1   :  { %312 = vlog2.f32 %v153_v0  ;;  %v177_v2 = vsub.f32 %v157_v62, %v452_v29  ;;  %v192_v29 = vmul.f32 0.5, %v171_v8 }
 0x1f2   :  { %v303_v1 = vpop.eup %302 }
 0x1f3   :  { %v305_v3 = vpop.eup %304  ;;  %v161_v6 = vmul.f32 0.6931472, %v303_v1  ;;  %v184_v19 = vmul.f32 %v177_v2, %v72_v5 }
 0x1f4   :  { %v159_v9 = vmul.f32 0.6931472, %v305_v3 }
 0x1f5   :  { %v179_v16 = vsub.f32 %v161_v6, %v456_v33 }
 0x1f6   :  { %v307_v18 = vpop.eup %306  ;;  %v178_v21 = vsub.f32 %v159_v9, %v459_v34  ;;  %v198_v34 = vadd.f32 %v191_v28, %v184_v19 }
 0x1f7   :  { %v309_v22 = vpop.eup %308  ;;  %v186_v11 = vmul.f32 %v179_v16, %v74_v10  ;;  %v165_v24 = vmul.f32 0.6931472, %v307_v18 }
 0x1f8   :  { %v185_v17 = vmul.f32 %v178_v21, %v73_v15  ;;  %v163_v30 = vmul.f32 0.6931472, %v309_v22 }
 0x1f9   :  { %v181_v33 = vsub.f32 %v165_v24, %v464_v39  ;;  %v200_v44 = vadd.f32 %v193_v31, %v186_v11 }
 0x1fa   :  { %v311_v36 = vpop.eup %310  ;;  %v199_v38 = vadd.f32 %v192_v29, %v185_v17  ;;  %v180_v41 = vsub.f32 %v163_v30, %v467_v40  ;;  %v196_v40 = vmul.f32 0.5, %v175_v37 }
 0x1fb   :  { %v313_v42 = vpop.eup %312  ;;  %v169_v47 = vmul.f32 0.6931472, %v311_v36  ;;  %v188_v23 = vmul.f32 %v181_v33, %v76_v35 }
 0x1fc   :  { %v252_v49 = vadd.f32 %v199_v38, %v198_v34  ;;  %v187_v50 = vmul.f32 %v180_v41, %v75_v20  ;;  %v167_v51 = vmul.f32 0.6931472, %v313_v42 }
 0x1fd   :  { %v183_v39 = vsub.f32 %v169_v47, %v472_v45  ;;  %v202_v59 = vadd.f32 %v195_v54, %v188_v23 }
 0x1fe   :  { %v253_v25 = vadd.f32 %v252_v49, %v200_v44  ;;  %v201_v55 = vadd.f32 %v194_v32, %v187_v50  ;;  %v182_v56 = vsub.f32 %v167_v51, %v475_v46 }
 0x1ff   :  { %v190_v58 = vmul.f32 %v183_v39, %v78_v52 }
 0x200   :  { %v254_v27 = vadd.f32 %v253_v25, %v201_v55  ;;  %v189_v60 = vmul.f32 %v182_v56, %v77_v53 }
 0x201   :  { %v204_v61 = vadd.f32 %v197_v57, %v190_v58 }
 0x202   :  { %v255_v62 = vadd.f32 %v254_v27, %v202_v59  ;;  %v203_v63 = vadd.f32 %v196_v40, %v189_v60 }
 0x203   :  { %v250_v0 = vsel %vm229_vm0, %v204_v61, 0.0 }
 0x204   :  { %v256_v1 = vadd.f32 %v255_v62, %v203_v63 }
 0x206   :  { %v257_v45 = vadd.f32 %v256_v1, %v250_v0 }
 0x208   :  { %259 = vst [vmem:[#allocation7] sm:$0xff] %v257_v45 }
 0x209   :  { %369 = shalt.err (!%p366_p6)
}
 0x20a   :  { %s370_s10 = scalar_lea.hbm %s507_s2, 128 }
 0x20b   :  { %p371_p7 = scmp.ne.s32.totalorder %s507_s2, %s370_s10  ;;  %p374_p8 = scmp.lt.u32.totalorder %s370_s10, %s507_s2 }
 0x20d   :  { %p376_p9 = pnand %p374_p8, %p371_p7 }
 0x20f   :  { %379 = shalt.err (!%p376_p9)
}
 0x210   :  { %269 = dma.vmem_to_hbm [thread:$0]  %s267_s6, 128, %s507_s2, [#allocation4]  }
 0x211   :  { %384 = dma.done.wait [#allocation4], 128  }
 0x212   :  { %385 = vsyncadd [#allocation4], 4294967168 }
 0x213   :  { %273 = vsyncpa [#allocation3], 1 }
 0x214   :  { %274 = vsyncpa [#allocation6], 1 }
 0x215   :  { %275 = vsyncpa [#allocation4], 1 }

</bundles_post_ra>
